<compile_context>
chip_gen: v5e
topology: v5e:2x2
jax: 0.10.0
libtpu: 0.0.40
codegen_flags: <defaults>
</compile_context>

<pallas_src>
import jax
import jax.numpy as jnp
from jax.experimental import pallas as pl
from jax.experimental.pallas import tpu as pltpu

LANES = 128
SUBLANES = 8
MAX_BLOCK_ROWS = 2048   # (2048,128) f32 block = 1 MiB; 2 inputs x 2 bufs = 4 MiB VMEM
NUM_SPLITS = 2          # megacore split for v7x; harmless on single-TC chips


def _as_rows_of_lanes(a):
    """Flatten to (rows, 128).  Pure (free) reshape when a.size % 1024 == 0;
    otherwise zero-pad the flat tail (zeros contribute exactly 0 to the MSE)."""
    flat = a.reshape(-1)
    pad = (-flat.shape[0]) % (SUBLANES * LANES)
    if pad:
        flat = jnp.pad(flat, (0, pad))
    return flat.reshape(-1, LANES)


def _as_2d(a):
    if a.ndim == 0:
        return a.reshape(1, 1)
    if a.ndim == 1:
        return a.reshape(1, -1)
    return a.reshape(-1, a.shape[-1])


def _choose_blocking(rows):
    """Pick (block_rows, num_splits, blocks_per_split).

    Guarantees num_splits * blocks_per_split == cdiv(rows, block_rows) so no
    index_map ever produces an out-of-range block index.  Prefers block sizes
    near MAX_BLOCK_ROWS; falls back to a single split if no nearby block size
    makes the block count divisible by NUM_SPLITS.
    """
    block_rows = min(MAX_BLOCK_ROWS, rows)
    for br in range(block_rows, max(block_rows - 16 * SUBLANES, 0), -SUBLANES):
        n_blocks = pl.cdiv(rows, br)
        if n_blocks % NUM_SPLITS == 0:
            return br, NUM_SPLITS, n_blocks // NUM_SPLITS
    return block_rows, 1, pl.cdiv(rows, block_rows)


def _make_vae_loss_kernel(rows, block_rows, bpc, needs_mask):
    def kernel(xhat_ref, x_ref, mu_ref, lv_ref, o_ref, acc_ref):
        c = pl.program_id(0)   # parallel (TensorCore) split axis
        i = pl.program_id(1)   # sequential reduction axis

        @pl.when(i == 0)
        def _init():
            acc_ref[...] = jnp.zeros_like(acc_ref)

        # KLD term: tiny (B*Z elems) -> compute once, on the first step of the
        # first split, and deposit it into lane 0 of the accumulator.
        @pl.when(jnp.logical_and(i == 0, c == 0))
        def _kld():
            mu = mu_ref[...].astype(jnp.float32)
            lv = lv_ref[...].astype(jnp.float32)
            kld = -0.5 * jnp.sum(1.0 + lv - mu * mu - jnp.exp(lv))
            lane = jax.lax.broadcasted_iota(jnp.int32, acc_ref.shape, 1)
            acc_ref[...] += jnp.where(lane == 0, kld, 0.0)

        # MSE term: streamed in big blocks, cast per-tile, lane-wise partials.
        d = xhat_ref[...].astype(jnp.float32) - x_ref[...].astype(jnp.float32)
        d2 = d * d
        if needs_mask:
            # Partial last block: data beyond `rows` is undefined -> mask it.
            row0 = (c * bpc + i) * block_rows
            rowid = row0 + jax.lax.broadcasted_iota(jnp.int32, d2.shape, 0)
            d2 = jnp.where(rowid < rows, d2, 0.0)
        acc_ref[...] += jnp.sum(d2, axis=0, keepdims=True)

        @pl.when(i == pl.num_programs(1) - 1)
        def _finalize():
            o_ref[...] = acc_ref[...]

    return kernel


@jax.jit
def vae_loss(xhat, x, mu, logvar):
    a = _as_rows_of_lanes(xhat)
    b = _as_rows_of_lanes(x)
    mu2 = _as_2d(mu)
    lv2 = _as_2d(logvar)

    rows = a.shape[0]
    block_rows, num_splits, bpc = _choose_blocking(rows)
    needs_mask = (rows % block_rows) != 0

    kernel = _make_vae_loss_kernel(rows, block_rows, bpc, needs_mask)
    in_map = lambda c, i: (c * bpc + i, 0)

    partials = pl.pallas_call(
        kernel,
        out_shape=jax.ShapeDtypeStruct((num_splits, 1, LANES), jnp.float32),
        grid_spec=pltpu.PrefetchScalarGridSpec(
            num_scalar_prefetch=0,
            grid=(num_splits, bpc),
            in_specs=[
                pl.BlockSpec((block_rows, LANES), in_map),
                pl.BlockSpec((block_rows, LANES), in_map),
                pl.BlockSpec(mu2.shape, lambda c, i: (0, 0)),   # untiled, resident
                pl.BlockSpec(lv2.shape, lambda c, i: (0, 0)),   # untiled, resident
            ],
            out_specs=pl.BlockSpec((None, 1, LANES), lambda c, i: (c, 0, 0)),
            scratch_shapes=[pltpu.VMEM((1, LANES), jnp.float32)],
        ),
        compiler_params=pltpu.CompilerParams(
            dimension_semantics=("parallel", "arbitrary")),
    )(a, b, mu2, lv2)

    # Tiny final reduction (num_splits * 128 floats, includes the KLD term).
    return jnp.sum(partials)


def vae_loss_ref(xhat, x, mu, logvar):
    """Pure-JAX reference matching the PyTorch semantics."""
    xhat = xhat.astype(jnp.float32)
    x = x.astype(jnp.float32)
    mu = mu.astype(jnp.float32)
    logvar = logvar.astype(jnp.float32)
    loss_mse = jnp.sum((xhat - x) ** 2)
    loss_kld = -0.5 * jnp.sum(1.0 + logvar - mu ** 2 - jnp.exp(logvar))
    return loss_mse + loss_kld


if __name__ == "__main__":
    key = jax.random.PRNGKey(0)
    k1, k2, k3, k4 = jax.random.split(key, 4)

    # Small shapes consistent with a conv VAE: NCHW images, latent dim 32.
    B, C, H, W = 2, 4, 16, 16
    Z = 32
    xhat = jax.random.uniform(k1, (B, C, H, W), dtype=jnp.float32)   # reconstruction
    x = jax.random.uniform(k2, (B, C, H, W), dtype=jnp.float32)      # target
    mu = jax.random.normal(k3, (B, Z), dtype=jnp.float32)
    logvar = 0.1 * jax.random.normal(k4, (B, Z), dtype=jnp.float32)

    out = vae_loss(xhat, x, mu, logvar)
    jax.block_until_ready(out)

    ref = vae_loss_ref(xhat, x, mu, logvar)
    assert jnp.allclose(out, ref, rtol=1e-5, atol=1e-5), (out, ref)

    print("KERNEL_OK")
</pallas_src>

<mosaic_0001>
module attributes {stable_mosaic.version = 11 : i64} {
  func.func @kernel(%arg0: i32, %arg1: i32, %arg2: memref<8x128xf32, #tpu.memory_space<vmem>>, %arg3: memref<8x128xf32, #tpu.memory_space<vmem>>, %arg4: memref<2x32xf32, #tpu.memory_space<vmem>>, %arg5: memref<2x32xf32, #tpu.memory_space<vmem>>, %arg6: memref<1x1x128xf32, #tpu.memory_space<vmem>>, %arg7: memref<1x128xf32, #tpu.memory_space<vmem>>) attributes {dimension_semantics = [#tpu.dimension_semantics<parallel>, #tpu.dimension_semantics<arbitrary>], iteration_bounds = array<i64: 2, 1>, scalar_prefetch = 0 : i64, scratch_operands = 1 : i64, tpu.core_type = #tpu.core_type<tc>, window_params = [{transform_indices = @transform_0, window_bounds = array<i64: 8, 128>}, {transform_indices = @transform_1, window_bounds = array<i64: 8, 128>}, {pipeline_mode = #tpu.pipeline_mode<synchronous>, transform_indices = @transform_2, window_bounds = array<i64: 2, 32>}, {pipeline_mode = #tpu.pipeline_mode<synchronous>, transform_indices = @transform_3, window_bounds = array<i64: 2, 32>}, {transform_indices = @transform_4, window_bounds = array<i64: 1, 1, 128>}]} {
    %c0_i32 = arith.constant 0 : i32
    %0 = arith.cmpi eq, %arg1, %c0_i32 : i32
    %1 = arith.extui %0 : i1 to i32
    %c0_i32_0 = arith.constant 0 : i32
    %2 = arith.cmpi ne, %1, %c0_i32_0 : i32
    scf.if %2 {
      %cst_13 = arith.constant 0.000000e+00 : f32
      %20 = vector.broadcast %cst_13 : f32 to vector<1x128xf32>
      %c0_14 = arith.constant 0 : index
      %c0_15 = arith.constant 0 : index
      %21 = vector.load %arg7[%c0_14, %c0_15] : memref<1x128xf32, #tpu.memory_space<vmem>>, vector<1x128xf32>
      tpu.vector_store %arg7[%c0_14, %c0_15], %20 {strides = array<i32>} : memref<1x128xf32, #tpu.memory_space<vmem>>, vector<1x128xf32>,
    } else {
    }
    %c0_i32_1 = arith.constant 0 : i32
    %3 = arith.cmpi eq, %arg1, %c0_i32_1 : i32
    %c0_i32_2 = arith.constant 0 : i32
    %4 = arith.cmpi eq, %arg0, %c0_i32_2 : i32
    %5 = arith.andi %3, %4 : i1
    %6 = arith.extui %5 : i1 to i32
    %c0_i32_3 = arith.constant 0 : i32
    %7 = arith.cmpi ne, %6, %c0_i32_3 : i32
    scf.if %7 {
      %c0_13 = arith.constant 0 : index
      %c0_14 = arith.constant 0 : index
      %20 = vector.load %arg4[%c0_13, %c0_14] : memref<2x32xf32, #tpu.memory_space<vmem>>, vector<2x32xf32>
      %c0_15 = arith.constant 0 : index
      %c0_16 = arith.constant 0 : index
      %21 = vector.load %arg5[%c0_15, %c0_16] : memref<2x32xf32, #tpu.memory_space<vmem>>, vector<2x32xf32>
      %cst_17 = arith.constant 1.000000e+00 : f32
      %22 = vector.broadcast %cst_17 : f32 to vector<2x32xf32>
      %23 = arith.addf %22, %21 : vector<2x32xf32>
      %24 = arith.mulf %20, %20 : vector<2x32xf32>
      %25 = arith.subf %23, %24 : vector<2x32xf32>
      %26 = math.exp %21 : vector<2x32xf32>
      %27 = arith.subf %25, %26 : vector<2x32xf32>
      %28 = vector.shape_cast %27 : vector<2x32xf32> to vector<1x2x32xf32>
      %cst_18 = arith.constant dense<0.000000e+00> : vector<1xf32>
      %29 = vector.multi_reduction <add>, %28, %cst_18 [1, 2] : vector<1x2x32xf32> to vector<1xf32>
      %30 = vector.shape_cast %29 : vector<1xf32> to vector<1x1x1xf32>
      %31 = vector.extract %30[0, 0, 0] : f32 from vector<1x1x1xf32>
      %cst_19 = arith.constant -5.000000e-01 : f32
      %32 = arith.mulf %cst_19, %31 : f32
      %33 = tpu.iota {dimensions = array<i32: 1>} : vector<1x128xi32>
      %c0_20 = arith.constant 0 : index
      %c0_21 = arith.constant 0 : index
      %34 = vector.load %arg7[%c0_20, %c0_21] : memref<1x128xf32, #tpu.memory_space<vmem>>, vector<1x128xf32>
      %c0_i32_22 = arith.constant 0 : i32
      %35 = vector.broadcast %c0_i32_22 : i32 to vector<1x128xi32>
      %36 = arith.cmpi eq, %33, %35 : vector<1x128xi32>
      %cst_23 = arith.constant 0.000000e+00 : f32
      %37 = vector.broadcast %32 : f32 to vector<1x128xf32>
      %38 = vector.broadcast %cst_23 : f32 to vector<1x128xf32>
      %39 = arith.select %36, %37, %38 : vector<1x128xi1>, vector<1x128xf32>
      %40 = arith.addf %34, %39 : vector<1x128xf32>
      %c0_24 = arith.constant 0 : index
      %c0_25 = arith.constant 0 : index
      %41 = vector.load %arg7[%c0_24, %c0_25] : memref<1x128xf32, #tpu.memory_space<vmem>>, vector<1x128xf32>
      tpu.vector_store %arg7[%c0_24, %c0_25], %40 {strides = array<i32>} : memref<1x128xf32, #tpu.memory_space<vmem>>, vector<1x128xf32>,
    } else {
    }
    %c0 = arith.constant 0 : index
    %c0_4 = arith.constant 0 : index
    %8 = vector.load %arg2[%c0, %c0_4] : memref<8x128xf32, #tpu.memory_space<vmem>>, vector<8x128xf32>
    %c0_5 = arith.constant 0 : index
    %c0_6 = arith.constant 0 : index
    %9 = vector.load %arg3[%c0_5, %c0_6] : memref<8x128xf32, #tpu.memory_space<vmem>>, vector<8x128xf32>
    %10 = arith.subf %8, %9 : vector<8x128xf32>
    %11 = arith.mulf %10, %10 : vector<8x128xf32>
    %c0_7 = arith.constant 0 : index
    %c0_8 = arith.constant 0 : index
    %12 = vector.load %arg7[%c0_7, %c0_8] : memref<1x128xf32, #tpu.memory_space<vmem>>, vector<1x128xf32>
    %cst = arith.constant dense<0.000000e+00> : vector<128xf32>
    %13 = vector.multi_reduction <add>, %11, %cst [0] : vector<8x128xf32> to vector<128xf32>
    %14 = vector.shape_cast %13 : vector<128xf32> to vector<1x128xf32>
    %15 = arith.addf %12, %14 : vector<1x128xf32>
    %c0_9 = arith.constant 0 : index
    %c0_10 = arith.constant 0 : index
    %16 = vector.load %arg7[%c0_9, %c0_10] : memref<1x128xf32, #tpu.memory_space<vmem>>, vector<1x128xf32>
    tpu.vector_store %arg7[%c0_9, %c0_10], %15 {strides = array<i32>} : memref<1x128xf32, #tpu.memory_space<vmem>>, vector<1x128xf32>,
    %c0_i32_11 = arith.constant 0 : i32
    %17 = arith.cmpi eq, %arg1, %c0_i32_11 : i32
    %18 = arith.extui %17 : i1 to i32
    %c0_i32_12 = arith.constant 0 : i32
    %19 = arith.cmpi ne, %18, %c0_i32_12 : i32
    scf.if %19 {
      %c0_13 = arith.constant 0 : index
      %c0_14 = arith.constant 0 : index
      %20 = vector.load %arg7[%c0_13, %c0_14] : memref<1x128xf32, #tpu.memory_space<vmem>>, vector<1x128xf32>
      %c0_15 = arith.constant 0 : index
      %c0_16 = arith.constant 0 : index
      %c0_17 = arith.constant 0 : index
      %21 = vector.load %arg6[%c0_15, %c0_16, %c0_17] : memref<1x1x128xf32, #tpu.memory_space<vmem>>, vector<1x1x128xf32>
      %22 = vector.shape_cast %21 : vector<1x1x128xf32> to vector<1x128xf32>
      %23 = vector.shape_cast %20 : vector<1x128xf32> to vector<1x1x128xf32>
      tpu.vector_store %arg6[%c0_15, %c0_16, %c0_17], %23 {strides = array<i32>} : memref<1x1x128xf32, #tpu.memory_space<vmem>>, vector<1x1x128xf32>,
    } else {
    }
    return
  }
  func.func @transform_0(%arg0: i32, %arg1: i32) -> (i32, i32) {
    %c1_i32 = arith.constant 1 : i32
    %0 = arith.muli %arg0, %c1_i32 : i32
    %1 = arith.addi %0, %arg1 : i32
    %c0_i32 = arith.constant 0 : i32
    %c0_i32_0 = arith.constant 0 : i32
    return %1, %c0_i32 : i32, i32
  }
  func.func @transform_1(%arg0: i32, %arg1: i32) -> (i32, i32) {
    %c1_i32 = arith.constant 1 : i32
    %0 = arith.muli %arg0, %c1_i32 : i32
    %1 = arith.addi %0, %arg1 : i32
    %c0_i32 = arith.constant 0 : i32
    %c0_i32_0 = arith.constant 0 : i32
    return %1, %c0_i32 : i32, i32
  }
  func.func @transform_2(%arg0: i32, %arg1: i32) -> (i32, i32) {
    %c0_i32 = arith.constant 0 : i32
    %c0_i32_0 = arith.constant 0 : i32
    %c0_i32_1 = arith.constant 0 : i32
    return %c0_i32, %c0_i32_0 : i32, i32
  }
  func.func @transform_3(%arg0: i32, %arg1: i32) -> (i32, i32) {
    %c0_i32 = arith.constant 0 : i32
    %c0_i32_0 = arith.constant 0 : i32
    %c0_i32_1 = arith.constant 0 : i32
    return %c0_i32, %c0_i32_0 : i32, i32
  }
  func.func @transform_4(%arg0: i32, %arg1: i32) -> (i32, i32, i32) {
    %c0_i32 = arith.constant 0 : i32
    %c0_i32_0 = arith.constant 0 : i32
    %c0_i32_1 = arith.constant 0 : i32
    return %arg0, %c0_i32, %c0_i32_0 : i32, i32, i32
  }
}

</mosaic_0001>

<bundles_post_ra>
// kernel: vae_loss.1
= control target key start
LH: loop header
LB: loop body
LE: loop exit
PB: predicated region body
PF: predicated region fallthrough
CT: control target
= control target key end

     0   :  { %s447_s15 = smov 0   ;;  %s449_s16 = smov 0   ;;  %s504_s0 = inlined_call_operand.vmem [shape: f32[16,128], index: 0, kind: input, shape index: {}]   ;;  %s505_s1 = inlined_call_operand.vmem [shape: f32[16,128], index: 1, kind: input, shape index: {}]   ;;  %s506_s2 = inlined_call_operand.vmem [shape: f32[2,32], index: 2, kind: input, shape index: {}]   ;;  %s507_s3 = inlined_call_operand.vmem [shape: f32[2,32], index: 3, kind: input, shape index: {}]   ;;  %s508_s4 = inlined_call_operand.vmem [shape: f32[2,1,128], index: 4, kind: output, shape index: {}]  }
   0x1   :  { %s451_s17 = smov 0  }
   0x2 LB: > { %s26_s18 = sadd.s32 1, %s415_s16  ;;  %p361_p0 = scmp.ge.s32.totalorder %s419_s17, 1  ;;  %s419_s17 = sphi %s451_s17, %s14_s17   ;;  %s415_s16 = sphi %s449_s16, %s510_s16   ;;  %s411_s15 = sphi %s447_s15, %s509_s15  }
   0x3   : > { %p28_p1 = scmp.ge.s32.totalorder %s26_s18, 2  ;;  %p190_p2 = scmp.lt.s32.totalorder %s419_s17, 3 }
   0x5   : > { %s512_s18 = smov (%p28_p1, %s26_s18), 0  ;;  %p191_p3 = pnand %p361_p0, %p190_p2 }
   0x6   : > { %p220_p4 = scmp.lt.s32.totalorder (!%p191_p3), %s411_s15, 1  ;;  %p239_p5 = scmp.eq.s32.totalorder (!%p191_p3), %s411_s15, 0 }
   0x7   : > { %194 = sbr.rel (%p191_p3) target bundleno = 240 (0xf0), region = 36 }
   0xc   : > { %v421_v0 = vmov 0.0   ;;  %s514_s15 = smov (!%p220_p4, %s411_s15), 1  ;;  %243 = sbr.rel (!%p239_p5) target bundleno = 211 (0xd3), region = 44  ;;  %v244_v1 = vld [vmem:[%s506_s2] sm:$0x3] (%p239_p5)  ;;  %vm252_vm0 = vcmask (%p239_p5), 254976   ;;  %v264_v17 = vlaneseq (%p239_p5) }
   0xd   : > { %238 = vst [vmem:[#allocation2] sm:$0x1] %v421_v0  ;;  %s362_s19 = sshll.u32 %s514_s15, 3  ;;  %s233_s22 = scalar_lea.vmem %s508_s4, %s514_s15  ;;  %v245_v2 = vld [vmem:[%s507_s3] sm:$0x3] (%p239_p5)  ;;  %v247_v5 = vmul.f32 (%p239_p5), %v244_v1, %v244_v1 }
   0xe   : > { %s475_s25 = scalar_lea.vmem %s504_s0, %s362_s19  ;;  %s480_s28 = scalar_lea.vmem %s505_s1, %s362_s19  ;;  %v249_v3 = vmul.f32 (%p239_p5), 1.442695, %v245_v2  ;;  %v246_v4 = vadd.f32 (%p239_p5), 1.0, %v245_v2  ;;  %v265_v18 = vand.u32 (%p239_p5), 127, %v264_v17 }
  0x10   : > { %395 = vpow2.f32 (%p239_p5), %v249_v3  ;;  %v248_v6 = vsub.f32 (%p239_p5), %v246_v4, %v247_v5  ;;  %vm267_vm1 = vcmp.eq.s32.totalorder (%p239_p5), %v265_v18, 0 }
  0x14   : > { %v266_v19 = vld [vmem:[#allocation2] sm:$0x1] }
  0x16   : > { %v396_v7 = vpop.eup %395 }
  0x17   : > { %v251_v8 = vsub.f32 %v248_v6, %v396_v7 }
  0x19   : > { %v253_v9 = vsel %vm252_vm0, %v251_v8, 0.0 }
  0x1a   : > { %254 = vadd.xlane.f32.xlu0 %v253_v9 }
  0x8d   : > { %v255_v10 = vpop.xlane.xlu0 %254 }
  0x8e   : > { %v256_v11 = vrot.slane %v255_v10, 4 }
  0x90   : > { %v257_v12 = vadd.f32 %v256_v11, %v255_v10 }
  0x92   : > { %v258_v13 = vrot.slane %v257_v12, 2 }
  0x94   : > { %v259_v14 = vadd.f32 %v258_v13, %v257_v12 }
  0x96   : > { %v260_v15 = vrot.slane %v259_v14, 1 }
  0x98   : > { %v261_v16 = vadd.f32 %v260_v15, %v259_v14 }
  0x9a   : > { %368 = vpush %v261_v16 }
  0xcb   : > { %s369_s7 = spop %368 }
  0xcc   : > { %s263_s8 = smul.f32 -0.5, %s369_s7 }
  0xce   : > { %v268_v20 = vstv %s263_s8 }
  0xcf   : > { %v269_v21 = vsel %vm267_vm1, %v268_v20, 0.0 }
  0xd0   : > { %v270_v22 = vadd.f32 %v269_v21, %v266_v19 }
  0xd2   : > { %271 = vst [vmem:[#allocation2] sm:$0x1] %v270_v22 }
  0xd3 PF: > { %v272_v23 = vld [vmem:[%s475_s25] sm:$0xff] }
  0xd4   : > { %v273_v24 = vld [vmem:[%s480_s28] sm:$0xff] }
  0xd5   : > { %v274_v25 = vsub.f32 %v272_v23, %v273_v24 }
  0xd7   : > { %v275_v26 = vmul.f32 %v274_v25, %v274_v25 }
  0xd9   : > { %v277_v27 = vrot.slane %v275_v26, 4  ;;  %v276_v32 = vld [vmem:[#allocation2] sm:$0x1] }
  0xdb   : > { %v278_v28 = vadd.f32 %v277_v27, %v275_v26 }
  0xdd   : > { %v279_v29 = vrot.slane %v278_v28, 2 }
  0xdf   : > { %v280_v30 = vadd.f32 %v279_v29, %v278_v28 }
  0xe1   : > { %v281_v31 = vrot.slane %v280_v30, 1 }
  0xe3   : > { %v282_v33 = vadd.f32 %v281_v31, %v280_v30 }
  0xe5   : > { %v283_v34 = vadd.f32 %v282_v33, %v276_v32 }
  0xe7   : > { %284 = vst [vmem:[#allocation2] sm:$0x1] %v283_v34 }
  0xee   : > { %v288_v35 = vld [vmem:[#allocation2] sm:$0x1] }
  0xef   : > { %289 = vst [vmem:[%s233_s22] sm:$0x1] %v288_v35 }
  0xf0 PF: > { %s14_s17 = sadd.s32 1, %s419_s17   ;;  %s509_s15 = smov %s415_s16 }
  0xf1   : > { %p11_p6 = scmp.ge.s32.totalorder %s14_s17, 4   ;;  %s510_s16 = smov %s512_s18 }
  0xf3   :  { %13 = sbr.rel (!%p11_p6) target bundleno = 2 (0x2), region = 81 }

</bundles_post_ra>
